<compile_context>
chip_gen: v7x
topology: tpu7x:2x2x1
jax: 0.10.0
libtpu: 0.0.40
codegen_flags: <defaults>
</compile_context>

<pallas_src>
import functools

import jax
import jax.numpy as jnp
from jax.experimental import pallas as pl
from jax.experimental.pallas import tpu as pltpu

# ----------------------------- constants ------------------------------------
NUM_ACTIONS = 4
NUM_PARAMETERS_PER_MOVEMENT_DIST = 2
BETA_EPSILON = 1e-3
NUM_MIXTURE_COMPONENTS = 3

NUM_DIST_PARAMS = NUM_MIXTURE_COMPONENTS * NUM_PARAMETERS_PER_MOVEMENT_DIST  # 6
OUTPUT_DIM = NUM_ACTIONS * (1 + NUM_DIST_PARAMS)                             # 28
OUTPUT_SPLIT = [NUM_ACTIONS, NUM_ACTIONS * NUM_DIST_PARAMS]                  # [4, 24]
assert sum(OUTPUT_SPLIT) == OUTPUT_DIM

STATE_DIM = 16
STRATEGY_DIM = 8
IN_DIM = STATE_DIM + STRATEGY_DIM    # 24: states|strategies concatenated
IN_PAD = 32                          # padded contraction dim of first matmul
ANALYZER_OUT_DIM = 32                # == conditional_analyzer.output_dim
HIDDEN_DIMS = (90, 100, 110)

PAD = 128                            # lane-dense width for hidden feature axes
OUT_PAD = 32                         # lane width of output slab (28 -> 32)
DEFAULT_TILE_N = 2048                # batch rows per grid step
VMEM_LIMIT_BYTES = 48 * 1024 * 1024  # explicit scoped-VMEM limit (< v7x 64 MiB)


# ------------------------------ kernel ---------------------------------------
def _policy_kernel(
    x_ref,                                            # (TILE_N, IN_PAD)
    wa_ref, ba_ref,                                   # analyzer (fused, padded)
    w1_ref, b1_ref, w2_ref, b2_ref, w3_ref, b3_ref, w4_ref, b4_ref,
    out_ref,                                          # (TILE_N, OUT_PAD)
    *, compute_dtype,
):
    f32 = jnp.float32

    def mm(x, w_ref):
        # MXU matmul in compute_dtype (bf16 default), f32 accumulate.
        return jnp.dot(x.astype(compute_dtype), w_ref[...],
                       preferred_element_type=f32)

    # synthetic ConditionalAnalyzer: relu([states|strategies] @ Wa + ba)
    a = jnp.maximum(mm(x_ref[...], wa_ref) + ba_ref[...], 0.0)

    # MLP: in -> 90 -> relu -> 100 -> relu -> 110 -> relu -> 28
    # (feature axes zero-padded -> identical numerics, unmasked layouts)
    h = jnp.maximum(mm(a, w1_ref) + b1_ref[...], 0.0)
    h = jnp.maximum(mm(h, w2_ref) + b2_ref[...], 0.0)
    h = jnp.maximum(mm(h, w3_ref) + b3_ref[...], 0.0)
    out = mm(h, w4_ref) + b4_ref[...]                 # (TILE_N, OUT_PAD) f32

    # One lane-dense output slab: lanes [0,4) raw logits, lanes [4,32)
    # relu(.) + BETA_EPSILON (beta params; lanes >=28 are discarded padding).
    lane = jax.lax.broadcasted_iota(jnp.int32, out.shape, 1)
    res = jnp.where(lane < NUM_ACTIONS, out,
                    jnp.maximum(out, 0.0) + BETA_EPSILON)
    out_ref[...] = res.astype(out_ref.dtype)


# ------------------------------ wrapper ---------------------------------------
def _round_up(x, m):
    return (x + m - 1) // m * m


def _pad2(a, rows, cols):
    r, c = a.shape
    return jnp.pad(a, ((0, rows - r), (0, cols - c)))


def policy_predictor_forward(states, strategies, params, mode: str = "train",
                             *, compute_dtype=jnp.bfloat16,
                             output_dtype=jnp.float32,
                             tile_n: int = DEFAULT_TILE_N):
    """Returns (logits, beta_parameters) matching the PyTorch module.

    logits:          (n, NUM_ACTIONS)
    beta_parameters: (n, NUM_ACTIONS, NUM_MIXTURE_COMPONENTS,
                      NUM_PARAMETERS_PER_MOVEMENT_DIST)
    """
    del mode  # TODO(synk): mode is unused in the synthetic analyzer stub.
    n = states.shape[0]
    f32 = jnp.float32

    # --- wrapper-side prep (free XLA): fuse analyzer weights, zero-pad feature
    #     axes, cast matmul operands to compute_dtype --------------------------
    x = jnp.concatenate([states, strategies], axis=1).astype(compute_dtype)
    x = jnp.pad(x, ((0, 0), (0, IN_PAD - IN_DIM)))            # K: 24 -> 32

    wa = jnp.concatenate([params["wa_s"], params["wa_t"]], axis=0)   # (24, 32)
    wa = _pad2(wa, IN_PAD, PAD).astype(compute_dtype)
    ba = _pad2(params["ba"], 1, PAD).astype(f32)
    w1 = _pad2(params["w1"], PAD, PAD).astype(compute_dtype)
    b1 = _pad2(params["b1"], 1, PAD).astype(f32)
    w2 = _pad2(params["w2"], PAD, PAD).astype(compute_dtype)
    b2 = _pad2(params["b2"], 1, PAD).astype(f32)
    w3 = _pad2(params["w3"], PAD, PAD).astype(compute_dtype)
    b3 = _pad2(params["b3"], 1, PAD).astype(f32)
    w4 = _pad2(params["w4"], PAD, OUT_PAD).astype(compute_dtype)   # (128, 32)
    b4 = _pad2(params["b4"], 1, OUT_PAD).astype(f32)               # (1, 32)

    # --- batch tiling: 1-D grid over rows, weights VMEM-resident --------------
    tile_n = _round_up(max(int(tile_n), 8), 8)
    # Cap so the grid has >=2 steps whenever the batch allows it (v7x megacore).
    half = _round_up(max((n + 1) // 2, 8), 8)
    tile_n = min(tile_n, half)
    n_pad = _round_up(n, tile_n)
    x = jnp.pad(x, ((0, n_pad - n), (0, 0)))
    grid = (n_pad // tile_n,)

    row_in_spec = pl.BlockSpec((tile_n, IN_PAD), lambda i: (i, 0))
    row_out_spec = pl.BlockSpec((tile_n, OUT_PAD), lambda i: (i, 0))

    def resident(arr):   # loaded once, stays in VMEM across all grid steps
        return pl.BlockSpec(arr.shape, lambda i: (0, 0))

    weights = (wa, ba, w1, b1, w2, b2, w3, b3, w4, b4)

    out = pl.pallas_call(
        functools.partial(_policy_kernel, compute_dtype=compute_dtype),
        out_shape=jax.ShapeDtypeStruct((n_pad, OUT_PAD), output_dtype),
        grid=grid,
        in_specs=[row_in_spec] + [resident(w) for w in weights],
        out_specs=row_out_spec,
        compiler_params=pltpu.CompilerParams(
            dimension_semantics=("parallel",),      # shard batch across TCs
            vmem_limit_bytes=VMEM_LIMIT_BYTES),
    )(x, *weights)

    out = out.astype(f32)
    logits = out[:n, :NUM_ACTIONS]
    beta_parameters = out[:n, NUM_ACTIONS:OUTPUT_DIM].reshape(
        n, NUM_ACTIONS, NUM_MIXTURE_COMPONENTS, NUM_PARAMETERS_PER_MOVEMENT_DIST)
    return logits, beta_parameters


# --------------------------- parameter init -----------------------------------
def init_params(key):
    ks = jax.random.split(key, 12)

    def lin(k, fan_in, fan_out):
        scale = 1.0 / jnp.sqrt(jnp.float32(fan_in))
        return jax.random.normal(k, (fan_in, fan_out), jnp.float32) * scale

    return {
        # synthetic ConditionalAnalyzer
        "wa_s": lin(ks[0], STATE_DIM, ANALYZER_OUT_DIM),
        "wa_t": lin(ks[1], STRATEGY_DIM, ANALYZER_OUT_DIM),
        "ba": jax.random.normal(ks[2], (1, ANALYZER_OUT_DIM), jnp.float32) * 0.01,
        # MLP
        "w1": lin(ks[3], ANALYZER_OUT_DIM, 90),
        "b1": jax.random.normal(ks[4], (1, 90), jnp.float32) * 0.01,
        "w2": lin(ks[5], 90, 100),
        "b2": jax.random.normal(ks[6], (1, 100), jnp.float32) * 0.01,
        "w3": lin(ks[7], 100, 110),
        "b3": jax.random.normal(ks[8], (1, 110), jnp.float32) * 0.01,
        "w4": lin(ks[9], 110, OUTPUT_DIM),
        "b4": jax.random.normal(ks[10], (1, OUTPUT_DIM), jnp.float32) * 0.01,
    }


# ------------------------- pure-JAX reference ---------------------------------
def reference_forward(states, strategies, p):
    analysis = jnp.maximum(
        states @ p["wa_s"] + strategies @ p["wa_t"] + p["ba"], 0.0)
    h = jnp.maximum(analysis @ p["w1"] + p["b1"], 0.0)
    h = jnp.maximum(h @ p["w2"] + p["b2"], 0.0)
    h = jnp.maximum(h @ p["w3"] + p["b3"], 0.0)
    out = h @ p["w4"] + p["b4"]
    logits = out[:, :NUM_ACTIONS]
    parameters = out[:, NUM_ACTIONS:].reshape(
        states.shape[0], NUM_ACTIONS, NUM_MIXTURE_COMPONENTS,
        NUM_PARAMETERS_PER_MOVEMENT_DIST)
    beta = jnp.maximum(parameters, 0.0) + BETA_EPSILON
    return logits, beta


# ------------------------------- main ------------------------------------------
if __name__ == "__main__":
    key = jax.random.PRNGKey(0)
    k_params, k_states, k_strats = jax.random.split(key, 3)

    n = 8
    states = jax.random.normal(k_states, (n, STATE_DIM), jnp.float32)
    strategies = jax.random.normal(k_strats, (n, STRATEGY_DIM), jnp.float32)
    params = init_params(k_params)
    ref_logits, ref_beta = reference_forward(states, strategies, params)

    # 1) f32 compute path — tight check against the pure-JAX reference
    fwd_f32 = jax.jit(functools.partial(policy_predictor_forward, mode="train",
                                        compute_dtype=jnp.float32))
    logits, beta = fwd_f32(states, strategies, params)
    jax.block_until_ready((logits, beta))
    assert logits.shape == (n, NUM_ACTIONS)
    assert beta.shape == (n, NUM_ACTIONS, NUM_MIXTURE_COMPONENTS,
                          NUM_PARAMETERS_PER_MOVEMENT_DIST)
    assert jnp.allclose(logits, ref_logits, atol=1e-4, rtol=1e-4)
    assert jnp.allclose(beta, ref_beta, atol=1e-4, rtol=1e-4)

    # 2) multi-tile grid + batch padding (n not a multiple of the tile), f32
    n2 = 40
    states2 = jax.random.normal(jax.random.PRNGKey(1), (n2, STATE_DIM), jnp.float32)
    strategies2 = jax.random.normal(jax.random.PRNGKey(2), (n2, STRATEGY_DIM),
                                    jnp.float32)
    fwd_tiled = jax.jit(functools.partial(policy_predictor_forward, mode="train",
                                          compute_dtype=jnp.float32, tile_n=16))
    logits2, beta2 = fwd_tiled(states2, strategies2, params)
    jax.block_until_ready((logits2, beta2))
    ref_logits2, ref_beta2 = reference_forward(states2, strategies2, params)
    assert jnp.allclose(logits2, ref_logits2, atol=1e-4, rtol=1e-4)
    assert jnp.allclose(beta2, ref_beta2, atol=1e-4, rtol=1e-4)

    # 3) default path: bf16 MXU compute, f32 output — loose check vs f32 ref
    fwd = jax.jit(functools.partial(policy_predictor_forward, mode="train"))
    logits_b, beta_b = fwd(states, strategies, params)
    jax.block_until_ready((logits_b, beta_b))
    assert jnp.allclose(logits_b, ref_logits, atol=0.2, rtol=0.1)
    assert jnp.allclose(beta_b, ref_beta, atol=0.2, rtol=0.1)

    # 4) optional bf16 output slab (inference fast path) — very loose check
    fwd_bf16_out = jax.jit(functools.partial(policy_predictor_forward,
                                             mode="train",
                                             output_dtype=jnp.bfloat16))
    logits_c, beta_c = fwd_bf16_out(states, strategies, params)
    jax.block_until_ready((logits_c, beta_c))
    assert jnp.allclose(logits_c, ref_logits, atol=0.25, rtol=0.15)
    assert jnp.allclose(beta_c, ref_beta, atol=0.25, rtol=0.15)

    print("KERNEL_OK")
</pallas_src>

<mosaic_0001>
module attributes {stable_mosaic.version = 11 : i64} {
  func.func @_policy_kernel(%arg0: i32, %arg1: memref<8x32xf32, #tpu.memory_space<vmem>>, %arg2: memref<32x128xf32, #tpu.memory_space<vmem>>, %arg3: memref<1x128xf32, #tpu.memory_space<vmem>>, %arg4: memref<128x128xf32, #tpu.memory_space<vmem>>, %arg5: memref<1x128xf32, #tpu.memory_space<vmem>>, %arg6: memref<128x128xf32, #tpu.memory_space<vmem>>, %arg7: memref<1x128xf32, #tpu.memory_space<vmem>>, %arg8: memref<128x128xf32, #tpu.memory_space<vmem>>, %arg9: memref<1x128xf32, #tpu.memory_space<vmem>>, %arg10: memref<128x32xf32, #tpu.memory_space<vmem>>, %arg11: memref<1x32xf32, #tpu.memory_space<vmem>>, %arg12: memref<8x32xf32, #tpu.memory_space<vmem>>) attributes {dimension_semantics = [#tpu.dimension_semantics<parallel>], iteration_bounds = array<i64: 1>, scalar_prefetch = 0 : i64, scratch_operands = 0 : i64, tpu.core_type = #tpu.core_type<tc>, window_params = [{transform_indices = @transform_0, window_bounds = array<i64: 8, 32>}, {pipeline_mode = #tpu.pipeline_mode<synchronous>, transform_indices = @transform_1, window_bounds = array<i64: 32, 128>}, {pipeline_mode = #tpu.pipeline_mode<synchronous>, transform_indices = @transform_2, window_bounds = array<i64: 1, 128>}, {pipeline_mode = #tpu.pipeline_mode<synchronous>, transform_indices = @transform_3, window_bounds = array<i64: 128, 128>}, {pipeline_mode = #tpu.pipeline_mode<synchronous>, transform_indices = @transform_4, window_bounds = array<i64: 1, 128>}, {pipeline_mode = #tpu.pipeline_mode<synchronous>, transform_indices = @transform_5, window_bounds = array<i64: 128, 128>}, {pipeline_mode = #tpu.pipeline_mode<synchronous>, transform_indices = @transform_6, window_bounds = array<i64: 1, 128>}, {pipeline_mode = #tpu.pipeline_mode<synchronous>, transform_indices = @transform_7, window_bounds = array<i64: 128, 128>}, {pipeline_mode = #tpu.pipeline_mode<synchronous>, transform_indices = @transform_8, window_bounds = array<i64: 1, 128>}, {pipeline_mode = #tpu.pipeline_mode<synchronous>, transform_indices = @transform_9, window_bounds = array<i64: 128, 32>}, {pipeline_mode = #tpu.pipeline_mode<synchronous>, transform_indices = @transform_10, window_bounds = array<i64: 1, 32>}, {transform_indices = @transform_11, window_bounds = array<i64: 8, 32>}]} {
    %c0 = arith.constant 0 : index
    %c0_0 = arith.constant 0 : index
    %0 = vector.load %arg1[%c0, %c0_0] : memref<8x32xf32, #tpu.memory_space<vmem>>, vector<8x32xf32>
    %c0_1 = arith.constant 0 : index
    %c0_2 = arith.constant 0 : index
    %1 = vector.load %arg2[%c0_1, %c0_2] : memref<32x128xf32, #tpu.memory_space<vmem>>, vector<32x128xf32>
    %cst = arith.constant dense<0.000000e+00> : vector<8x128xf32>
    %2 = tpu.matmul %0, %1, %cst {dimension_numbers = #tpu.dot_dimension_numbers<[1], [0], [0], [1], [0, 0, 1, 1], [], []>} : vector<8x32xf32>, vector<32x128xf32>, vector<8x128xf32> -> vector<8x128xf32>
    %c0_3 = arith.constant 0 : index
    %c0_4 = arith.constant 0 : index
    %3 = vector.load %arg3[%c0_3, %c0_4] : memref<1x128xf32, #tpu.memory_space<vmem>>, vector<1x128xf32>
    %4 = vector.broadcast %3 : vector<1x128xf32> to vector<8x128xf32>
    %5 = arith.addf %2, %4 : vector<8x128xf32>
    %cst_5 = arith.constant 0.000000e+00 : f32
    %6 = vector.broadcast %cst_5 : f32 to vector<8x128xf32>
    %7 = arith.maximumf %5, %6 : vector<8x128xf32>
    %c0_6 = arith.constant 0 : index
    %c0_7 = arith.constant 0 : index
    %8 = vector.load %arg4[%c0_6, %c0_7] : memref<128x128xf32, #tpu.memory_space<vmem>>, vector<128x128xf32>
    %cst_8 = arith.constant dense<0.000000e+00> : vector<8x128xf32>
    %9 = tpu.matmul %7, %8, %cst_8 {dimension_numbers = #tpu.dot_dimension_numbers<[1], [0], [0], [1], [0, 0, 1, 1], [], []>} : vector<8x128xf32>, vector<128x128xf32>, vector<8x128xf32> -> vector<8x128xf32>
    %c0_9 = arith.constant 0 : index
    %c0_10 = arith.constant 0 : index
    %10 = vector.load %arg5[%c0_9, %c0_10] : memref<1x128xf32, #tpu.memory_space<vmem>>, vector<1x128xf32>
    %11 = vector.broadcast %10 : vector<1x128xf32> to vector<8x128xf32>
    %12 = arith.addf %9, %11 : vector<8x128xf32>
    %cst_11 = arith.constant 0.000000e+00 : f32
    %13 = vector.broadcast %cst_11 : f32 to vector<8x128xf32>
    %14 = arith.maximumf %12, %13 : vector<8x128xf32>
    %c0_12 = arith.constant 0 : index
    %c0_13 = arith.constant 0 : index
    %15 = vector.load %arg6[%c0_12, %c0_13] : memref<128x128xf32, #tpu.memory_space<vmem>>, vector<128x128xf32>
    %cst_14 = arith.constant dense<0.000000e+00> : vector<8x128xf32>
    %16 = tpu.matmul %14, %15, %cst_14 {dimension_numbers = #tpu.dot_dimension_numbers<[1], [0], [0], [1], [0, 0, 1, 1], [], []>} : vector<8x128xf32>, vector<128x128xf32>, vector<8x128xf32> -> vector<8x128xf32>
    %c0_15 = arith.constant 0 : index
    %c0_16 = arith.constant 0 : index
    %17 = vector.load %arg7[%c0_15, %c0_16] : memref<1x128xf32, #tpu.memory_space<vmem>>, vector<1x128xf32>
    %18 = vector.broadcast %17 : vector<1x128xf32> to vector<8x128xf32>
    %19 = arith.addf %16, %18 : vector<8x128xf32>
    %cst_17 = arith.constant 0.000000e+00 : f32
    %20 = vector.broadcast %cst_17 : f32 to vector<8x128xf32>
    %21 = arith.maximumf %19, %20 : vector<8x128xf32>
    %c0_18 = arith.constant 0 : index
    %c0_19 = arith.constant 0 : index
    %22 = vector.load %arg8[%c0_18, %c0_19] : memref<128x128xf32, #tpu.memory_space<vmem>>, vector<128x128xf32>
    %cst_20 = arith.constant dense<0.000000e+00> : vector<8x128xf32>
    %23 = tpu.matmul %21, %22, %cst_20 {dimension_numbers = #tpu.dot_dimension_numbers<[1], [0], [0], [1], [0, 0, 1, 1], [], []>} : vector<8x128xf32>, vector<128x128xf32>, vector<8x128xf32> -> vector<8x128xf32>
    %c0_21 = arith.constant 0 : index
    %c0_22 = arith.constant 0 : index
    %24 = vector.load %arg9[%c0_21, %c0_22] : memref<1x128xf32, #tpu.memory_space<vmem>>, vector<1x128xf32>
    %25 = vector.broadcast %24 : vector<1x128xf32> to vector<8x128xf32>
    %26 = arith.addf %23, %25 : vector<8x128xf32>
    %cst_23 = arith.constant 0.000000e+00 : f32
    %27 = vector.broadcast %cst_23 : f32 to vector<8x128xf32>
    %28 = arith.maximumf %26, %27 : vector<8x128xf32>
    %c0_24 = arith.constant 0 : index
    %c0_25 = arith.constant 0 : index
    %29 = vector.load %arg10[%c0_24, %c0_25] : memref<128x32xf32, #tpu.memory_space<vmem>>, vector<128x32xf32>
    %cst_26 = arith.constant dense<0.000000e+00> : vector<8x32xf32>
    %30 = tpu.matmul %28, %29, %cst_26 {dimension_numbers = #tpu.dot_dimension_numbers<[1], [0], [0], [1], [0, 0, 1, 1], [], []>} : vector<8x128xf32>, vector<128x32xf32>, vector<8x32xf32> -> vector<8x32xf32>
    %c0_27 = arith.constant 0 : index
    %c0_28 = arith.constant 0 : index
    %31 = vector.load %arg11[%c0_27, %c0_28] : memref<1x32xf32, #tpu.memory_space<vmem>>, vector<1x32xf32>
    %32 = vector.broadcast %31 : vector<1x32xf32> to vector<8x32xf32>
    %33 = arith.addf %30, %32 : vector<8x32xf32>
    %34 = tpu.iota {dimensions = array<i32: 1>} : vector<8x32xi32>
    %c4_i32 = arith.constant 4 : i32
    %35 = vector.broadcast %c4_i32 : i32 to vector<8x32xi32>
    %36 = arith.cmpi slt, %34, %35 : vector<8x32xi32>
    %cst_29 = arith.constant 0.000000e+00 : f32
    %37 = vector.broadcast %cst_29 : f32 to vector<8x32xf32>
    %38 = arith.maximumf %33, %37 : vector<8x32xf32>
    %cst_30 = arith.constant 1.000000e-03 : f32
    %39 = vector.broadcast %cst_30 : f32 to vector<8x32xf32>
    %40 = arith.addf %38, %39 : vector<8x32xf32>
    %41 = arith.select %36, %33, %40 : vector<8x32xi1>, vector<8x32xf32>
    %c0_31 = arith.constant 0 : index
    %c0_32 = arith.constant 0 : index
    %42 = vector.load %arg12[%c0_31, %c0_32] : memref<8x32xf32, #tpu.memory_space<vmem>>, vector<8x32xf32>
    tpu.vector_store %arg12[%c0_31, %c0_32], %41 {strides = array<i32>} : memref<8x32xf32, #tpu.memory_space<vmem>>, vector<8x32xf32>,
    return
  }
  func.func @transform_0(%arg0: i32) -> (i32, i32) {
    %c0_i32 = arith.constant 0 : i32
    %c0_i32_0 = arith.constant 0 : i32
    return %arg0, %c0_i32 : i32, i32
  }
  func.func @transform_1(%arg0: i32) -> (i32, i32) {
    %c0_i32 = arith.constant 0 : i32
    %c0_i32_0 = arith.constant 0 : i32
    %c0_i32_1 = arith.constant 0 : i32
    return %c0_i32, %c0_i32_0 : i32, i32
  }
  func.func @transform_2(%arg0: i32) -> (i32, i32) {
    %c0_i32 = arith.constant 0 : i32
    %c0_i32_0 = arith.constant 0 : i32
    %c0_i32_1 = arith.constant 0 : i32
    return %c0_i32, %c0_i32_0 : i32, i32
  }
  func.func @transform_3(%arg0: i32) -> (i32, i32) {
    %c0_i32 = arith.constant 0 : i32
    %c0_i32_0 = arith.constant 0 : i32
    %c0_i32_1 = arith.constant 0 : i32
    return %c0_i32, %c0_i32_0 : i32, i32
  }
  func.func @transform_4(%arg0: i32) -> (i32, i32) {
    %c0_i32 = arith.constant 0 : i32
    %c0_i32_0 = arith.constant 0 : i32
    %c0_i32_1 = arith.constant 0 : i32
    return %c0_i32, %c0_i32_0 : i32, i32
  }
  func.func @transform_5(%arg0: i32) -> (i32, i32) {
    %c0_i32 = arith.constant 0 : i32
    %c0_i32_0 = arith.constant 0 : i32
    %c0_i32_1 = arith.constant 0 : i32
    return %c0_i32, %c0_i32_0 : i32, i32
  }
  func.func @transform_6(%arg0: i32) -> (i32, i32) {
    %c0_i32 = arith.constant 0 : i32
    %c0_i32_0 = arith.constant 0 : i32
    %c0_i32_1 = arith.constant 0 : i32
    return %c0_i32, %c0_i32_0 : i32, i32
  }
  func.func @transform_7(%arg0: i32) -> (i32, i32) {
    %c0_i32 = arith.constant 0 : i32
    %c0_i32_0 = arith.constant 0 : i32
    %c0_i32_1 = arith.constant 0 : i32
    return %c0_i32, %c0_i32_0 : i32, i32
  }
  func.func @transform_8(%arg0: i32) -> (i32, i32) {
    %c0_i32 = arith.constant 0 : i32
    %c0_i32_0 = arith.constant 0 : i32
    %c0_i32_1 = arith.constant 0 : i32
    return %c0_i32, %c0_i32_0 : i32, i32
  }
  func.func @transform_9(%arg0: i32) -> (i32, i32) {
    %c0_i32 = arith.constant 0 : i32
    %c0_i32_0 = arith.constant 0 : i32
    %c0_i32_1 = arith.constant 0 : i32
    return %c0_i32, %c0_i32_0 : i32, i32
  }
  func.func @transform_10(%arg0: i32) -> (i32, i32) {
    %c0_i32 = arith.constant 0 : i32
    %c0_i32_0 = arith.constant 0 : i32
    %c0_i32_1 = arith.constant 0 : i32
    return %c0_i32, %c0_i32_0 : i32, i32
  }
  func.func @transform_11(%arg0: i32) -> (i32, i32) {
    %c0_i32 = arith.constant 0 : i32
    %c0_i32_0 = arith.constant 0 : i32
    return %arg0, %c0_i32 : i32, i32
  }
}

</mosaic_0001>

<bundles_post_ra>
// kernel: policy_predictor_forward.1
= control target key start
LH: loop header
LB: loop body
LE: loop exit
PB: predicated region body
PF: predicated region fallthrough
CT: control target
= control target key end

     0   :  { %v846_v0 = vmov 0.0|0.0   ;;  %vm847_vm0 = vmmov 0   ;;  %v848_v4 = vmov 0.0   ;;  %vm50_vm1 = vcmask 261120   ;;  %s1180_s1 = inlined_call_operand.vmem [shape: f32[32,128], index: 1, kind: input, shape index: {}]   ;;  %s1181_s3 = inlined_call_operand.vmem [shape: f32[128,128], index: 3, kind: input, shape index: {}]   ;;  %s1182_s0 = inlined_call_operand.vmem [shape: f32[8,32], index: 0, kind: input, shape index: {}]   ;;  %s1183_s5 = inlined_call_operand.vmem [shape: f32[128,128], index: 5, kind: input, shape index: {}]   ;;  %s1184_s2 = inlined_call_operand.vmem [shape: f32[1,128], index: 2, kind: input, shape index: {}]   ;;  %s1185_s7 = inlined_call_operand.vmem [shape: f32[128,128], index: 7, kind: input, shape index: {}]   ;;  %s1186_s4 = inlined_call_operand.vmem [shape: f32[1,128], index: 4, kind: input, shape index: {}]   ;;  %s1187_s9 = inlined_call_operand.vmem [shape: f32[128,32], index: 9, kind: input, shape index: {}]   ;;  %s1188_s6 = inlined_call_operand.vmem [shape: f32[1,128], index: 6, kind: input, shape index: {}]   ;;  %s1189_s8 = inlined_call_operand.vmem [shape: f32[1,128], index: 8, kind: input, shape index: {}]   ;;  %s1190_s10 = inlined_call_operand.vmem [shape: f32[1,32], index: 10, kind: input, shape index: {}]   ;;  %s1191_s11 = inlined_call_operand.vmem [shape: f32[8,32], index: 11, kind: output, shape index: {}]  }
   0x1   :  { %741 = vmatprep.subr.bf16.mxu0 %v846_v0  ;;  %v39_v1 = vld [vmem:[%s1180_s1] sm:$0xff]  ;;  %v40_v2 = vld [vmem:[%s1180_s1 + $0x8] sm:$0xff]  ;;  %v41_v3 = vld [vmem:[%s1180_s1 + $0x10] sm:$0xff]  ;;  %598 = vmatprep.mubr.msk.f32.mxu0 %vm847_vm0, %v848_v4 }
   0x2   :  { %v742_v5 = vpack.c.bf16 %v40_v2, %v39_v1  ;;  %v42_v6 = vld [vmem:[%s1180_s1 + $0x18] sm:$0xff]  ;;  %747 = vmatprep.subr.bf16.mxu1 %v846_v0  ;;  %v125_v7 = vld [vmem:[%s1181_s3] sm:$0xff]  ;;  %633 = vmatprep.mubr.msk.f32.mxu1 %vm847_vm0, %v848_v4  ;;  %v126_v8 = vld [vmem:[%s1181_s3 + $0x8] sm:$0xff] }
   0x3   :  { %v127_v9 = vld [vmem:[%s1181_s3 + $0x10] sm:$0xff]  ;;  %v128_v10 = vld [vmem:[%s1181_s3 + $0x18] sm:$0xff]  ;;  %v745_v11 = vpack.c.bf16 %v42_v6, %v41_v3  ;;  %v748_v12 = vpack.c.bf16 %v126_v8, %v125_v7  ;;  %v129_v14 = vld [vmem:[%s1181_s3 + $0x20] sm:$0xff] }
   0x4   :  { %743 = vmatpush3.bf16.msra.mxu0 %v742_v5  ;;  %v751_v13 = vpack.c.bf16 %v128_v10, %v127_v9  ;;  %v130_v15 = vld [vmem:[%s1181_s3 + $0x28] sm:$0xff]  ;;  %v38_v16 = vld [vmem:[%s1182_s0] sm:$0xff]  ;;  %v131_v18 = vld [vmem:[%s1181_s3 + $0x30] sm:$0xff] }
   0x5   :  { %744 = vmatprep.subr.bf16.mxu0 %v846_v0  ;;  %749 = vmatpush3.bf16.msra.mxu1 %v748_v12  ;;  %v754_v17 = vpack.c.bf16 %v130_v15, %v129_v14  ;;  %v132_v19 = vld [vmem:[%s1181_s3 + $0x38] sm:$0xff]  ;;  %v133_v21 = vld [vmem:[%s1181_s3 + $0x40] sm:$0xff]  ;;  %v134_v22 = vld [vmem:[%s1181_s3 + $0x48] sm:$0xff] }
   0x6   :  { %750 = vmatprep.subr.bf16.mxu1 %v846_v0  ;;  %v757_v20 = vpack.c.bf16 %v132_v19, %v131_v18  ;;  %v760_v23 = vpack.c.bf16 %v134_v22, %v133_v21  ;;  %v135_v24 = vld [vmem:[%s1181_s3 + $0x50] sm:$0xff]  ;;  %v136_v25 = vld [vmem:[%s1181_s3 + $0x58] sm:$0xff]  ;;  %v137_v27 = vld [vmem:[%s1181_s3 + $0x60] sm:$0xff] }
   0x7   :  { %v763_v26 = vpack.c.bf16 %v136_v25, %v135_v24  ;;  %v138_v28 = vld [vmem:[%s1181_s3 + $0x68] sm:$0xff]  ;;  %v139_v30 = vld [vmem:[%s1181_s3 + $0x70] sm:$0xff]  ;;  %v140_v31 = vld [vmem:[%s1181_s3 + $0x78] sm:$0xff] }
   0x8   :  { %746 = vmatpush3.bf16.msra.mxu0 %v745_v11  ;;  %v766_v29 = vpack.c.bf16 %v138_v28, %v137_v27  ;;  %v769_v32 = vpack.c.bf16 %v140_v31, %v139_v30  ;;  %v219_v33 = vld [vmem:[%s1183_s5] sm:$0xff]  ;;  %v220_v34 = vld [vmem:[%s1183_s5 + $0x8] sm:$0xff]  ;;  %v221_v35 = vld [vmem:[%s1183_s5 + $0x10] sm:$0xff] }
   0x9   :  { %771 = vmatprep.subr.bf16.mxu0 %v846_v0  ;;  %752 = vmatpush3.bf16.msra.mxu1 %v751_v13  ;;  %v772_v36 = vpack.c.bf16 %v220_v34, %v219_v33  ;;  %v222_v37 = vld [vmem:[%s1183_s5 + $0x18] sm:$0xff]  ;;  %v223_v39 = vld [vmem:[%s1183_s5 + $0x20] sm:$0xff]  ;;  %v224_v40 = vld [vmem:[%s1183_s5 + $0x28] sm:$0xff] }
   0xa   :  { %753 = vmatprep.subr.bf16.mxu1 %v846_v0  ;;  %v775_v38 = vpack.c.bf16 %v222_v37, %v221_v35  ;;  %v778_v41 = vpack.c.bf16 %v224_v40, %v223_v39  ;;  %v225_v42 = vld [vmem:[%s1183_s5 + $0x30] sm:$0xff]  ;;  %v226_v43 = vld [vmem:[%s1183_s5 + $0x38] sm:$0xff]  ;;  %v227_v45 = vld [vmem:[%s1183_s5 + $0x40] sm:$0xff] }
   0xb   :  { %599 = vmatmul.mubr.msk.f32.vlgmr.msra.gmra.mrb[0].mxu0 %vm50_vm1, %v38_v16  ;;  %v781_v44 = vpack.c.bf16 %v226_v43, %v225_v42  ;;  %v228_v46 = vld [vmem:[%s1183_s5 + $0x48] sm:$0xff]  ;;  %v229_v48 = vld [vmem:[%s1183_s5 + $0x50] sm:$0xff]  ;;  %v230_v49 = vld [vmem:[%s1183_s5 + $0x58] sm:$0xff] }
   0xc   :  { %668 = vmatprep.mubr.msk.f32.mxu0 %vm847_vm0, %v848_v4  ;;  %773 = vmatpush3.bf16.msra.mxu0 %v772_v36  ;;  %v784_v47 = vpack.c.bf16 %v228_v46, %v227_v45  ;;  %v787_v50 = vpack.c.bf16 %v230_v49, %v229_v48  ;;  %v231_v51 = vld [vmem:[%s1183_s5 + $0x60] sm:$0xff]  ;;  %v232_v52 = vld [vmem:[%s1183_s5 + $0x68] sm:$0xff]  ;;  %v233_v59 = vld [vmem:[%s1183_s5 + $0x70] sm:$0xff] }
   0xd   :  { %755 = vmatpush3.bf16.msra.mxu1 %v754_v17  ;;  %774 = vmatprep.subr.bf16.mxu0 %v846_v0  ;;  %v790_v53 = vpack.c.bf16 %v232_v52, %v231_v51  ;;  %v511_v54 = vld [vmem:[%s1184_s2] ss:$0 sm:$0xff]  ;;  %v234_v60 = vld [vmem:[%s1183_s5 + $0x78] sm:$0xff]  ;;  %v314_v63 = vld [vmem:[%s1185_s7 + $0x8] sm:$0xff] }
   0xe   :  { %756 = vmatprep.subr.bf16.mxu1 %v846_v0  ;;  %v793_v61 = vpack.c.bf16 %v234_v60, %v233_v59  ;;  %v313_v62 = vld [vmem:[%s1185_s7] sm:$0xff]  ;;  %v315_v1 = vld [vmem:[%s1185_s7 + $0x10] sm:$0xff]  ;;  %v316_v3 = vld [vmem:[%s1185_s7 + $0x18] sm:$0xff] }
   0xf   :  { %v796_v2 = vpack.c.bf16 %v314_v63, %v313_v62  ;;  %v799_v5 = vpack.c.bf16 %v316_v3, %v315_v1  ;;  %v317_v6 = vld [vmem:[%s1185_s7 + $0x20] sm:$0xff]  ;;  %v318_v7 = vld [vmem:[%s1185_s7 + $0x28] sm:$0xff]  ;;  %v319_v9 = vld [vmem:[%s1185_s7 + $0x30] sm:$0xff] }
  0x10   :  { %776 = vmatpush3.bf16.msra.mxu0 %v775_v38  ;;  %v802_v8 = vpack.c.bf16 %v318_v7, %v317_v6  ;;  %v320_v10 = vld [vmem:[%s1185_s7 + $0x38] sm:$0xff]  ;;  %v321_v12 = vld [vmem:[%s1185_s7 + $0x40] sm:$0xff]  ;;  %v322_v13 = vld [vmem:[%s1185_s7 + $0x48] sm:$0xff] }
  0x11   :  { %758 = vmatpush3.bf16.msra.mxu1 %v757_v20  ;;  %777 = vmatprep.subr.bf16.mxu0 %v846_v0  ;;  %v805_v11 = vpack.c.bf16 %v320_v10, %v319_v9  ;;  %v808_v14 = vpack.c.bf16 %v322_v13, %v321_v12  ;;  %v323_v15 = vld [vmem:[%s1185_s7 + $0x50] sm:$0xff]  ;;  %v324_v16 = vld [vmem:[%s1185_s7 + $0x58] sm:$0xff]  ;;  %v325_v18 = vld [vmem:[%s1185_s7 + $0x60] sm:$0xff] }
  0x12   :  { %759 = vmatprep.subr.bf16.mxu1 %v846_v0  ;;  %v811_v17 = vpack.c.bf16 %v324_v16, %v323_v15  ;;  %v326_v19 = vld [vmem:[%s1185_s7 + $0x68] sm:$0xff]  ;;  %v513_v21 = vld [vmem:[%s1186_s4] ss:$0 sm:$0xff]  ;;  %v328_v27 = vld [vmem:[%s1185_s7 + $0x78] sm:$0xff] }
  0x13   :  { %v814_v20 = vpack.c.bf16 %v326_v19, %v325_v18  ;;  %v408_v30 = vld [vmem:[%s1187_s9 + $0x8] sm:$0xff]  ;;  %v411_v34 = vld [vmem:[%s1187_s9 + $0x20] sm:$0xff]  ;;  %v413_v37 = vld [vmem:[%s1187_s9 + $0x30] sm:$0xff] }
  0x14   :  { %779 = vmatpush3.bf16.msra.mxu0 %v778_v41  ;;  %v412_v35 = vld [vmem:[%s1187_s9 + $0x28] sm:$0xff]  ;;  %v414_v38 = vld [vmem:[%s1187_s9 + $0x38] sm:$0xff]  ;;  %v415_v40 = vld [vmem:[%s1187_s9 + $0x40] sm:$0xff] }
  0x15   :  { %761 = vmatpush3.bf16.msra.mxu1 %v760_v23  ;;  %780 = vmatprep.subr.bf16.mxu0 %v846_v0  ;;  %v826_v36 = vpack.c.bf16 %v412_v35, %v411_v34  ;;  %v829_v39 = vpack.c.bf16 %v414_v38, %v413_v37  ;;  %v416_v41 = vld [vmem:[%s1187_s9 + $0x48] sm:$0xff]  ;;  %v417_v43 = vld [vmem:[%s1187_s9 + $0x50] sm:$0xff]  ;;  %v419_v46 = vld [vmem:[%s1187_s9 + $0x60] sm:$0xff] }
  0x16   :  { %762 = vmatprep.subr.bf16.mxu1 %v846_v0  ;;  %v832_v42 = vpack.c.bf16 %v416_v41, %v415_v40  ;;  %v514_v49 = vld [vmem:[%s1188_s6] ss:$0 sm:$0xff] }
  0x17   :  { %v516_v62 = vld [vmem:[%s1190_s10] ss:$0 sm:$0xff] }
  0x18   :  { %782 = vmatpush3.bf16.msra.mxu0 %v781_v44  ;;  %v418_v44 = vld [vmem:[%s1187_s9 + $0x58] sm:$0xff] }
  0x19   :  { %764 = vmatpush3.bf16.msra.mxu1 %v763_v26  ;;  %783 = vmatprep.subr.bf16.mxu0 %v846_v0  ;;  %v327_v26 = vld [vmem:[%s1185_s7 + $0x70] sm:$0xff]  ;;  %v835_v45 = vpack.c.bf16 %v418_v44, %v417_v43 }
  0x1a   :  { %765 = vmatprep.subr.bf16.mxu1 %v846_v0  ;;  %v817_v28 = vpack.c.bf16 %v328_v27, %v327_v26 }
  0x1c   :  { %785 = vmatpush3.bf16.msra.mxu0 %v784_v47  ;;  %v420_v47 = vld [vmem:[%s1187_s9 + $0x68] sm:$0xff] }
  0x1d   :  { %767 = vmatpush3.bf16.msra.mxu1 %v766_v29  ;;  %786 = vmatprep.subr.bf16.mxu0 %v846_v0  ;;  %v407_v29 = vld [vmem:[%s1187_s9] sm:$0xff]  ;;  %v838_v48 = vpack.c.bf16 %v420_v47, %v419_v46 }
  0x1e   :  { %768 = vmatprep.subr.bf16.mxu1 %v846_v0  ;;  %v820_v31 = vpack.c.bf16 %v408_v30, %v407_v29 }
  0x20   :  { %788 = vmatpush3.bf16.msra.mxu0 %v787_v50 }
  0x21   :  { %770 = vmatpush3.bf16.msra.mxu1 %v769_v32  ;;  %789 = vmatprep.subr.bf16.mxu0 %v846_v0  ;;  %v410_v32 = vld [vmem:[%s1187_s9 + $0x18] sm:$0xff] }
  0x22   :  { %795 = vmatprep.subr.bf16.mxu1 %v846_v0 }
  0x24   :  { %791 = vmatpush3.bf16.msra.mxu0 %v790_v53 }
  0x25   :  { %792 = vmatprep.subr.bf16.mxu0 %v846_v0 }
  0x28   :  { %794 = vmatpush3.bf16.msra.mxu0 %v793_v61  ;;  %v500_v61 = vlaneseq }
  0x29   :  { %819 = vmatprep.subr.bf16.mxu0 %v846_v0 }
  0x2a   :  { %v501_v1 = vand.u32 127, %v500_v61 }
  0x2c   :  { %vm502_vm2 = vcmp.lt.s32.totalorder %v501_v1, 4 }
  0xde   :  { %v120_v55 = vpop.f32.mrb[0].mxu0 }
  0xdf   :  { %v121_v56 = vadd.f32 %v511_v54, %v120_v55  ;;  %v600_v57 = vpop.f32.mrb[1].mxu0  ;;  %v421_v54 = vld [vmem:[%s1187_s9 + $0x70] sm:$0xff]  ;;  %v422_v55 = vld [vmem:[%s1187_s9 + $0x78] sm:$0xff] }
  0xe1   :  { %v124_v58 = vmax.f32 %v121_v56, 0.0  ;;  %v841_v56 = vpack.c.bf16 %v422_v55, %v421_v54 }
  0xe3   :  { %634 = vmatmul.mubr.f32.vlgmr.msra.gmra.mrb[0].mxu1 %v124_v58 }
  0xe4   :  { %703 = vmatprep.mubr.msk.f32.mxu1 %vm847_vm0, %v848_v4  ;;  %797 = vmatpush3.bf16.msra.mxu1 %v796_v2 }
  0xe5   :  { %798 = vmatprep.subr.bf16.mxu1 %v846_v0 }
  0xe8   :  { %800 = vmatpush3.bf16.msra.mxu1 %v799_v5 }
  0xe9   :  { %801 = vmatprep.subr.bf16.mxu1 %v846_v0 }
  0xec   :  { %803 = vmatpush3.bf16.msra.mxu1 %v802_v8 }
  0xed   :  { %804 = vmatprep.subr.bf16.mxu1 %v846_v0 }
  0xf0   :  { %806 = vmatpush3.bf16.msra.mxu1 %v805_v11 }
  0xf1   :  { %807 = vmatprep.subr.bf16.mxu1 %v846_v0 }
  0xf4   :  { %809 = vmatpush3.bf16.msra.mxu1 %v808_v14 }
  0xf5   :  { %810 = vmatprep.subr.bf16.mxu1 %v846_v0 }
  0xf8   :  { %812 = vmatpush3.bf16.msra.mxu1 %v811_v17 }
  0xf9   :  { %813 = vmatprep.subr.bf16.mxu1 %v846_v0 }
  0xfc   :  { %815 = vmatpush3.bf16.msra.mxu1 %v814_v20 }
  0xfd   :  { %816 = vmatprep.subr.bf16.mxu1 %v846_v0 }
 0x100   :  { %818 = vmatpush3.bf16.msra.mxu1 %v817_v28 }
 0x1b6   :  { %v214_v22 = vpop.f32.mrb[0].mxu1 }
 0x1b7   :  { %v215_v23 = vadd.f32 %v513_v21, %v214_v22  ;;  %v635_v24 = vpop.f32.mrb[1].mxu1 }
 0x1b9   :  { %v218_v25 = vmax.f32 %v215_v23, 0.0 }
 0x1bb   :  { %669 = vmatmul.mubr.f32.vlgmr.msra.gmra.mrb[2].mxu0 %v218_v25 }
 0x1bc   :  { %738 = vmatprep.mubr.msk.f32.mxu0 %vm847_vm0, %v848_v4  ;;  %v409_v4 = vld [vmem:[%s1187_s9 + $0x10] sm:$0xff]  ;;  %821 = vmatpush3.bf16.msra.mxu0 %v820_v31 }
 0x1bd   :  { %v823_v33 = vpack.c.bf16 %v410_v32, %v409_v4  ;;  %822 = vmatprep.subr.bf16.mxu0 %v846_v0 }
 0x1c0   :  { %824 = vmatpush3.bf16.msra.mxu0 %v823_v33 }
 0x1c1   :  { %825 = vmatprep.subr.bf16.mxu0 %v846_v0 }
 0x1c4   :  { %827 = vmatpush3.bf16.msra.mxu0 %v826_v36 }
 0x1c5   :  { %828 = vmatprep.subr.bf16.mxu0 %v846_v0 }
 0x1c8   :  { %830 = vmatpush3.bf16.msra.mxu0 %v829_v39 }
 0x1c9   :  { %831 = vmatprep.subr.bf16.mxu0 %v846_v0 }
 0x1cc   :  { %833 = vmatpush3.bf16.msra.mxu0 %v832_v42 }
 0x1cd   :  { %834 = vmatprep.subr.bf16.mxu0 %v846_v0 }
 0x1d0   :  { %836 = vmatpush3.bf16.msra.mxu0 %v835_v45 }
 0x1d1   :  { %837 = vmatprep.subr.bf16.mxu0 %v846_v0 }
 0x1d4   :  { %839 = vmatpush3.bf16.msra.mxu0 %v838_v48 }
 0x1d5   :  { %840 = vmatprep.subr.bf16.mxu0 %v846_v0  ;;  %v515_v0 = vld [vmem:[%s1189_s8] ss:$0 sm:$0xff] }
 0x1d8   :  { %842 = vmatpush3.bf16.msra.mxu0 %v841_v56 }
 0x28e   :  { %v308_v50 = vpop.f32.mrb[2].mxu0 }
 0x28f   :  { %v309_v51 = vadd.f32 %v514_v49, %v308_v50  ;;  %v670_v52 = vpop.f32.mrb[3].mxu0 }
 0x291   :  { %v312_v53 = vmax.f32 %v309_v51, 0.0 }
 0x293   :  { %704 = vmatmul.mubr.f32.vlgmr.msra.gmra.mrb[2].mxu1 %v312_v53 }
 0x366   :  { %v402_v57 = vpop.f32.mrb[2].mxu1 }
 0x367   :  { %v403_v58 = vadd.f32 %v515_v0, %v402_v57  ;;  %v705_v59 = vpop.f32.mrb[3].mxu1 }
 0x369   :  { %v406_v60 = vmax.f32 %v403_v58, 0.0 }
 0x36b   :  { %739 = vmatmul.mubr.f32.vlgmr.msra.gmra.mrb[4].mxu0 %v406_v60 }
 0x43e   :  { %v496_v63 = vpop.f32.mrb[4].mxu0 }
 0x43f   :  { %v497_v2 = vadd.f32 %v516_v62, %v496_v63  ;;  %v740_v3 = vpop.f32.mrb[5].mxu0 }
 0x441   :  { %v503_v5 = vmax.f32 %v497_v2, 0.0 }
 0x443   :  { %v504_v6 = vadd.f32 0.001, %v503_v5 }
 0x445   :  { %v505_v7 = vsel %vm502_vm2, %v497_v2, %v504_v6 }
 0x446   :  { %506 = vst.msk [vmem:[%s1191_s11] sm:$0xff] %vm50_vm1, %v505_v7 }

</bundles_post_ra>
